<compile_context>
chip_gen: v7x
topology: tpu7x:2x2x1
jax: 0.10.0
libtpu: 0.0.40
codegen_flags: <defaults>
</compile_context>

<pallas_src>
import functools
import math

import jax
import jax.numpy as jnp
from jax import lax
from jax.experimental import pallas as pl
from jax.experimental.pallas import tpu as pltpu

_LANES = 128
_SUBLANES = 8
_CHUNK_ROWS = 512          # rows per inner elementwise chunk (bounds VMEM temps)


def _round_up(a, b):
    return ((a + b - 1) // b) * b


def _cdiv(a, b):
    return -(-a // b)


def _device_config():
    """(num_cores, row_tile_cap) chosen per TPU generation."""
    try:
        kind = jax.devices()[0].device_kind.lower()
    except Exception:
        kind = ""
    is_v7 = "v7" in kind
    big_vmem = is_v7 or ("v6" in kind)       # 32 MiB default scoped VMEM
    num_cores = 2 if is_v7 else 1            # only shard the grid on 2-TC v7x
    row_cap = 8192 if big_vmem else 4096     # v5e default scoped VMEM is 16 MiB
    return num_cores, row_cap


def _logloss_kernel(x_ref, y_ref, o_ref, acc_ref, *,
                    valid_rows, steps_per_core, tile, chunk,
                    full_blocks, needs_mask):
    c = pl.program_id(0)       # core (parallel) axis
    i = pl.program_id(1)       # reduction (arbitrary) axis

    @pl.when(i == 0)
    def _():
        acc_ref[...] = jnp.zeros_like(acc_ref)

    n_chunks = tile // chunk
    L = c * steps_per_core + i            # logical block index
    block_row0 = L * tile                 # first (logical) row of this block

    def chunk_sum(j, masked):
        r0 = pl.multiple_of(j * chunk, _SUBLANES)
        x = x_ref[pl.ds(r0, chunk), :].astype(jnp.float32)
        y = y_ref[pl.ds(r0, chunk), :].astype(jnp.float32)
        # y*log(x) + (1-y)*log(1-x); log1p(-x) == log(1-x), better near x ~ 1
        losses = y * jnp.log(x) + (1.0 - y) * jnp.log1p(-x)
        if masked:
            # Zero rows past the real array (Pallas-padded partial block or a
            # clamped duplicate block).  Must stay a select (jnp.where), not a
            # multiply-by-mask: padded rows may hold garbage -> NaN/Inf losses.
            ridx = block_row0 + r0 + lax.broadcasted_iota(
                jnp.int32, (chunk, _LANES), 0)
            losses = jnp.where(ridx < valid_rows, losses, 0.0)
        # Fold (chunk, 128) onto the vreg-shaped (8, 128) accumulator with
        # pure VPU adds -- no cross-lane reduce inside the hot loop.
        return losses.reshape(chunk // _SUBLANES, _SUBLANES, _LANES).sum(axis=0)

    zero = jnp.zeros((_SUBLANES, _LANES), jnp.float32)

    def fast_body(j, acc):
        return acc + chunk_sum(j, False)

    def masked_body(j, acc):
        return acc + chunk_sum(j, True)

    if not needs_mask:
        acc_ref[...] += lax.fori_loop(0, n_chunks, fast_body, zero)
    elif full_blocks == 0:
        acc_ref[...] += lax.fori_loop(0, n_chunks, masked_body, zero)
    else:
        # Mask work only executes (at runtime) on the tail block(s); all fully
        # valid blocks take the mask-free fast path.
        @pl.when(L < full_blocks)
        def _():
            acc_ref[...] += lax.fori_loop(0, n_chunks, fast_body, zero)

        @pl.when(L >= full_blocks)
        def _():
            acc_ref[...] += lax.fori_loop(0, n_chunks, masked_body, zero)

    @pl.when(i == pl.num_programs(1) - 1)
    def _():
        o_ref[...] = acc_ref[...]


def log_loss(x, y, *, row_tile=None, num_cores=None):
    """Pallas implementation of LogLoss.forward(x, y) -> scalar (-mean BCE)."""
    assert x.shape == y.shape
    total = x.size
    assert total > 0

    auto_cores, auto_cap = _device_config()
    if num_cores is None:
        num_cores = auto_cores
    if row_tile is None:
        row_tile = auto_cap

    x_flat = x.reshape(-1)
    y_flat = y.reshape(-1)

    # Lane tail: if total isn't a multiple of 128, pad with (x=0.5, y=0); each
    # pad element contributes exactly log(1/2), removed analytically below.
    # (Common, 128-aligned inputs take the zero-copy path.)
    rem = total % _LANES
    pad_count = 0
    if rem:
        pad_count = _LANES - rem
        x_flat = jnp.concatenate(
            [x_flat, jnp.full((pad_count,), 0.5, dtype=x_flat.dtype)])
        y_flat = jnp.concatenate(
            [y_flat, jnp.zeros((pad_count,), dtype=y_flat.dtype)])

    rows = (total + pad_count) // _LANES
    x2 = x_flat.reshape(rows, _LANES)     # bitcast reshape (no copy) when rem==0
    y2 = y_flat.reshape(rows, _LANES)

    if rows < num_cores * _SUBLANES:      # too small to split across TCs
        num_cores = 1

    # Row tiling: large lane-dense tiles; rows are NOT physically padded --
    # Pallas partial blocks + the in-kernel tail mask cover leftover rows.
    tile = min(row_tile, _round_up(_cdiv(rows, num_cores), _SUBLANES))
    chunk = min(_CHUNK_ROWS, tile)
    tile = _round_up(tile, chunk)         # tile divisible by inner chunk

    n_blocks = _cdiv(rows, tile)
    steps_per_core = _cdiv(n_blocks, num_cores)
    grid_blocks = num_cores * steps_per_core
    full_blocks = rows // tile            # blocks with no padded rows
    needs_mask = grid_blocks * tile != rows
    max_block = n_blocks - 1

    if grid_blocks == n_blocks:
        def in_idx(c, i):
            return (c * steps_per_core + i, 0)
    else:
        # A fully-out-of-range logical block (at most one duplicate from the
        # 2-core split) is clamped to a valid block index for the DMA; its
        # contribution is masked to zero in-kernel.
        def in_idx(c, i):
            return (jnp.minimum(c * steps_per_core + i, max_block), 0)

    kernel = functools.partial(
        _logloss_kernel, valid_rows=rows, steps_per_core=steps_per_core,
        tile=tile, chunk=chunk, full_blocks=full_blocks, needs_mask=needs_mask)

    bytes_in = x2.size * x2.dtype.itemsize + y2.size * y2.dtype.itemsize
    cost = pl.CostEstimate(
        flops=6 * rows * _LANES,
        transcendentals=2 * rows * _LANES,
        bytes_accessed=bytes_in + num_cores * _SUBLANES * _LANES * 4)

    partials = pl.pallas_call(
        kernel,
        out_shape=jax.ShapeDtypeStruct((num_cores * _SUBLANES, _LANES),
                                       jnp.float32),
        grid_spec=pltpu.PrefetchScalarGridSpec(
            num_scalar_prefetch=0,
            grid=(num_cores, steps_per_core),
            in_specs=[
                pl.BlockSpec((tile, _LANES), in_idx),
                pl.BlockSpec((tile, _LANES), in_idx),
            ],
            out_specs=pl.BlockSpec((_SUBLANES, _LANES), lambda c, i: (c, 0)),
            scratch_shapes=[pltpu.VMEM((_SUBLANES, _LANES), jnp.float32)],
        ),
        compiler_params=pltpu.CompilerParams(
            dimension_semantics=("parallel", "arbitrary"),
        ),
        cost_estimate=cost,
    )(x2, y2)

    # Final cross-lane reduce + analytic pad correction + negate + true mean.
    loss_sum = jnp.sum(partials)
    if pad_count:
        # each pad element (x=0.5, y=0) contributed log(0.5) = -ln 2
        loss_sum = loss_sum + jnp.float32(pad_count * math.log(2.0))
    return -(loss_sum / jnp.float32(total))


if __name__ == "__main__":
    key = jax.random.PRNGKey(0)
    kx, ky = jax.random.split(key)

    B, C, H, W = 2, 4, 16, 16  # NCHW, total = 2048 = 16 * 128 (zero-copy path)
    x = jax.nn.sigmoid(jax.random.normal(kx, (B, C, H, W), dtype=jnp.float32))
    x = jnp.clip(x, 1e-6, 1.0 - 1e-6)   # x must lie strictly in (0, 1)
    y = (jax.random.uniform(ky, (B, C, H, W)) > 0.5).astype(jnp.float32)

    out = jax.block_until_ready(log_loss(x, y))
    ref = -jnp.mean(y * jnp.log(x) + (1.0 - y) * jnp.log(1.0 - x))
    assert jnp.allclose(out, ref, rtol=1e-5, atol=1e-5), (out, ref)

    # ragged element count: exercises the lane-tail pad + analytic correction
    kx2, ky2 = jax.random.split(jax.random.PRNGKey(1))
    x_odd = jax.nn.sigmoid(jax.random.normal(kx2, (2, 3, 5, 7), jnp.float32))
    x_odd = jnp.clip(x_odd, 1e-6, 1.0 - 1e-6)
    y_odd = (jax.random.uniform(ky2, (2, 3, 5, 7)) > 0.5).astype(jnp.float32)
    out_odd = jax.block_until_ready(log_loss(x_odd, y_odd))
    ref_odd = -jnp.mean(y_odd * jnp.log(x_odd) +
                        (1.0 - y_odd) * jnp.log(1.0 - x_odd))
    assert jnp.allclose(out_odd, ref_odd, rtol=1e-5, atol=1e-5), (out_odd, ref_odd)

    # rows not a multiple of the tile: exercises Pallas partial blocks + the
    # pl.when-gated in-kernel row mask with NO wrapper-side pad/slice copy
    kx3, ky3 = jax.random.split(jax.random.PRNGKey(2))
    x_r = jax.nn.sigmoid(jax.random.normal(kx3, (2, 10, 13, 128), jnp.float32))
    x_r = jnp.clip(x_r, 1e-6, 1.0 - 1e-6)
    y_r = (jax.random.uniform(ky3, (2, 10, 13, 128)) > 0.5).astype(jnp.float32)
    out_r = jax.block_until_ready(log_loss(x_r, y_r))
    ref_r = -jnp.mean(y_r * jnp.log(x_r) + (1.0 - y_r) * jnp.log(1.0 - x_r))
    assert jnp.allclose(out_r, ref_r, rtol=1e-5, atol=1e-5), (out_r, ref_r)

    print("KERNEL_OK")
</pallas_src>

<mosaic_0001>
module attributes {stable_mosaic.version = 11 : i64} {
  func.func @_logloss_kernel(%arg0: i32, %arg1: i32, %arg2: memref<16x128xf32, #tpu.memory_space<vmem>>, %arg3: memref<16x128xf32, #tpu.memory_space<vmem>>, %arg4: memref<8x128xf32, #tpu.memory_space<vmem>>, %arg5: memref<8x128xf32, #tpu.memory_space<vmem>>) attributes {dimension_semantics = [#tpu.dimension_semantics<parallel>, #tpu.dimension_semantics<arbitrary>], iteration_bounds = array<i64: 1, 1>, scalar_prefetch = 0 : i64, scratch_operands = 1 : i64, tpu.core_type = #tpu.core_type<tc>, window_params = [{transform_indices = @transform_0, window_bounds = array<i64: 16, 128>}, {transform_indices = @transform_1, window_bounds = array<i64: 16, 128>}, {transform_indices = @transform_2, window_bounds = array<i64: 8, 128>}]} {
    %c0_i32 = arith.constant 0 : i32
    %0 = arith.cmpi eq, %arg1, %c0_i32 : i32
    %1 = arith.extui %0 : i1 to i32
    %c0_i32_0 = arith.constant 0 : i32
    %2 = arith.cmpi ne, %1, %c0_i32_0 : i32
    scf.if %2 {
      %cst_12 = arith.constant 0.000000e+00 : f32
      %28 = vector.broadcast %cst_12 : f32 to vector<8x128xf32>
      %c0_13 = arith.constant 0 : index
      %c0_14 = arith.constant 0 : index
      %29 = vector.load %arg5[%c0_13, %c0_14] : memref<8x128xf32, #tpu.memory_space<vmem>>, vector<8x128xf32>
      tpu.vector_store %arg5[%c0_13, %c0_14], %28 {strides = array<i32>} : memref<8x128xf32, #tpu.memory_space<vmem>>, vector<8x128xf32>,
    } else {
    }
    %cst = arith.constant 0.000000e+00 : f32
    %3 = vector.broadcast %cst : f32 to vector<8x128xf32>
    %c0 = arith.constant 0 : index
    %c0_1 = arith.constant 0 : index
    %4 = vector.load %arg5[%c0, %c0_1] : memref<8x128xf32, #tpu.memory_space<vmem>>, vector<8x128xf32>
    %c0_i32_2 = arith.constant 0 : i32
    %c16_i32 = arith.constant 16 : i32
    %5 = arith.muli %c0_i32_2, %c16_i32 : i32
    %6 = tpu.assume_multiple %5, 8 : i32
    %7 = arith.index_cast %6 : i32 to index
    %c0_3 = arith.constant 0 : index
    %8 = vector.load %arg2[%7, %c0_3] : memref<16x128xf32, #tpu.memory_space<vmem>>, vector<16x128xf32>
    %9 = arith.index_cast %6 : i32 to index
    %c0_4 = arith.constant 0 : index
    %10 = vector.load %arg3[%9, %c0_4] : memref<16x128xf32, #tpu.memory_space<vmem>>, vector<16x128xf32>
    %11 = math.log %8 : vector<16x128xf32>
    %12 = arith.mulf %10, %11 : vector<16x128xf32>
    %cst_5 = arith.constant 1.000000e+00 : f32
    %13 = vector.broadcast %cst_5 : f32 to vector<16x128xf32>
    %14 = arith.subf %13, %10 : vector<16x128xf32>
    %cst_6 = arith.constant 0.000000e+00 : f32
    %15 = vector.broadcast %cst_6 : f32 to vector<16x128xf32>
    %16 = arith.subf %15, %8 : vector<16x128xf32>
    %17 = math.log1p %16 : vector<16x128xf32>
    %18 = arith.mulf %14, %17 : vector<16x128xf32>
    %19 = arith.addf %12, %18 : vector<16x128xf32>
    %20 = vector.shape_cast %19 : vector<16x128xf32> to vector<2x8x128xf32>
    %cst_7 = arith.constant dense<0.000000e+00> : vector<8x128xf32>
    %21 = vector.multi_reduction <add>, %20, %cst_7 [0] : vector<2x8x128xf32> to vector<8x128xf32>
    %22 = arith.addf %3, %21 : vector<8x128xf32>
    %c1_i32 = arith.constant 1 : i32
    %23 = arith.addf %4, %22 : vector<8x128xf32>
    %c0_8 = arith.constant 0 : index
    %c0_9 = arith.constant 0 : index
    %24 = vector.load %arg5[%c0_8, %c0_9] : memref<8x128xf32, #tpu.memory_space<vmem>>, vector<8x128xf32>
    tpu.vector_store %arg5[%c0_8, %c0_9], %23 {strides = array<i32>} : memref<8x128xf32, #tpu.memory_space<vmem>>, vector<8x128xf32>,
    %c0_i32_10 = arith.constant 0 : i32
    %25 = arith.cmpi eq, %arg1, %c0_i32_10 : i32
    %26 = arith.extui %25 : i1 to i32
    %c0_i32_11 = arith.constant 0 : i32
    %27 = arith.cmpi ne, %26, %c0_i32_11 : i32
    scf.if %27 {
      %c0_12 = arith.constant 0 : index
      %c0_13 = arith.constant 0 : index
      %28 = vector.load %arg5[%c0_12, %c0_13] : memref<8x128xf32, #tpu.memory_space<vmem>>, vector<8x128xf32>
      %c0_14 = arith.constant 0 : index
      %c0_15 = arith.constant 0 : index
      %29 = vector.load %arg4[%c0_14, %c0_15] : memref<8x128xf32, #tpu.memory_space<vmem>>, vector<8x128xf32>
      tpu.vector_store %arg4[%c0_14, %c0_15], %28 {strides = array<i32>} : memref<8x128xf32, #tpu.memory_space<vmem>>, vector<8x128xf32>,
    } else {
    }
    return
  }
  func.func @transform_0(%arg0: i32, %arg1: i32) -> (i32, i32) {
    %c1_i32 = arith.constant 1 : i32
    %0 = arith.muli %arg0, %c1_i32 : i32
    %1 = arith.addi %0, %arg1 : i32
    %c0_i32 = arith.constant 0 : i32
    %c0_i32_0 = arith.constant 0 : i32
    return %1, %c0_i32 : i32, i32
  }
  func.func @transform_1(%arg0: i32, %arg1: i32) -> (i32, i32) {
    %c1_i32 = arith.constant 1 : i32
    %0 = arith.muli %arg0, %c1_i32 : i32
    %1 = arith.addi %0, %arg1 : i32
    %c0_i32 = arith.constant 0 : i32
    %c0_i32_0 = arith.constant 0 : i32
    return %1, %c0_i32 : i32, i32
  }
  func.func @transform_2(%arg0: i32, %arg1: i32) -> (i32, i32) {
    %c0_i32 = arith.constant 0 : i32
    %c0_i32_0 = arith.constant 0 : i32
    return %arg0, %c0_i32 : i32, i32
  }
}

</mosaic_0001>

<bundles_post_ra>
// kernel: tpu_custom_call.1
= control target key start
LH: loop header
LB: loop body
LE: loop exit
PB: predicated region body
PF: predicated region fallthrough
CT: control target
= control target key end

     0   :  { %7 = vsyncpa [#allocation4], 0  ;;  %s260_s0 = inlined_call_operand.hbm [shape: f32[16,128], index: 0, kind: input, shape index: {}]   ;;  %s261_s1 = inlined_call_operand.hbm [shape: f32[16,128], index: 1, kind: input, shape index: {}]   ;;  %s262_s2 = inlined_call_operand.hbm [shape: f32[8,128], index: 2, kind: output, shape index: {}]  }
   0x1   :  { %8 = vsyncpa [#allocation7], 0 }
   0x2   :  { %9 = vsyncpa [#allocation5], 0  ;;  %s204_s9 = smov [#allocation3]   ;;  %s132_s13 = scalar_lea.hbm %s260_s0, 256 }
   0x3   :  { %s19_s10 = sshll.u32 %s204_s9, 4  ;;  %p133_p0 = scmp.ne.s32.totalorder %s260_s0, %s132_s13  ;;  %s20_s10 = int_to_ptr.vmem [resolvable:$true] %s19_s10 }
   0x4   :  { %p136_p1 = scmp.lt.u32.totalorder %s132_s13, %s260_s0 }
   0x6   :  { %p138_p2 = pnand %p136_p1, %p133_p0 }
   0x8   :  { %141 = shalt.err (!%p138_p2)
}
   0x9   :  { %s142_s18 = scalar_lea.vmem %s20_s10, 256  ;;  %p147_p4 = scmp.lt.s32.totalorder %s20_s10, %s20_s10 }
   0xa   :  { %p143_p3 = scmp.ne.s32.totalorder %s20_s10, %s142_s18  ;;  %p148_p5 = scmp.lt.s32.totalorder %s142_s18, %s142_s18 }
   0xc   :  { %p149_p6 = por %p148_p5, %p147_p4 }
   0xe   :  { %p150_p7 = pnand %p149_p6, %p143_p3 }
  0x10   :  { %153 = shalt.err (!%p150_p7)
}
  0x11   :  { %s205_s19 = smov 128   ;;  %s206_s20 = smov 8  }
  0x12   :  { %25 = dma.hbm_to_vmem [thread:$0]  %s260_s0, 256, %s20_s10, [#allocation4], %s205_s19, %s205_s19, %s206_s20  }
  0x13   :  { %s207_s23 = smov [#allocation6]   ;;  %s154_s27 = scalar_lea.hbm %s261_s1, 256 }
  0x14   :  { %s35_s24 = sshll.u32 %s207_s23, 4  ;;  %p155_p8 = scmp.ne.s32.totalorder %s261_s1, %s154_s27  ;;  %s36_s24 = int_to_ptr.vmem [resolvable:$true] %s35_s24 }
  0x15   :  { %p158_p9 = scmp.lt.u32.totalorder %s154_s27, %s261_s1 }
  0x17   :  { %p160_p10 = pnand %p158_p9, %p155_p8 }
  0x19   :  { %163 = shalt.err (!%p160_p10)
}
  0x1a   :  { %s164_s4 = scalar_lea.vmem %s36_s24, 256  ;;  %p169_p12 = scmp.lt.s32.totalorder %s36_s24, %s36_s24 }
  0x1b   :  { %p165_p11 = scmp.ne.s32.totalorder %s36_s24, %s164_s4  ;;  %p170_p13 = scmp.lt.s32.totalorder %s164_s4, %s164_s4 }
  0x1d   :  { %p171_p0 = por %p170_p13, %p169_p12 }
  0x1f   :  { %p172_p1 = pnand %p171_p0, %p165_p11 }
  0x21   :  { %175 = shalt.err (!%p172_p1)
}
  0x22   :  { %41 = dma.hbm_to_vmem [thread:$0]  %s261_s1, 256, %s36_s24, [#allocation7], %s205_s19, %s205_s19, %s206_s20  }
  0x23   :  { %198 = dma.done.wait [#allocation4], 256  }
  0x24   :  { %199 = vsyncadd [#allocation4], 4294967040 }
  0x25   :  { %200 = dma.done.wait [#allocation7], 256  }
  0x26   :  { %201 = vsyncadd [#allocation7], 4294967040  ;;  %v58_v0 = vld [vmem:[#allocation3] sm:$0xff]  ;;  %v59_v1 = vld [vmem:[#allocation3 + $0x8] sm:$0xff]  ;;  %s208_s1 = smov [#allocation8]  }
  0x27   :  { %124 = vlog2.f32 %v58_v0  ;;  %v70_v2 = vsub.f32 0.0, %v58_v0  ;;  %v71_v3 = vsub.f32 0.0, %v59_v1  ;;  %v60_v13 = vld [vmem:[#allocation6] sm:$0xff]  ;;  %v61_v15 = vld [vmem:[#allocation6 + $0x8] sm:$0xff]  ;;  %s109_s6 = sshll.u32 %s208_s1, 4  ;;  %s110_s6 = int_to_ptr.vmem [resolvable:$true] %s109_s6 }
  0x28   :  { %126 = vlog2.f32 %v59_v1  ;;  %v68_v20 = vsub.f32 1.0, %v60_v13  ;;  %v69_v23 = vsub.f32 1.0, %v61_v15  ;;  %s176_s7 = scalar_lea.vmem %s110_s6, 128  ;;  %p181_p3 = scmp.lt.s32.totalorder %s110_s6, %s110_s6 }
  0x29   :  { %v72_v4 = vadd.f32 1.0, %v70_v2  ;;  %v81_v5 = vadd.f32 1.0, %v71_v3  ;;  %v75_v6 = vmul.f32 -0.5, %v70_v2  ;;  %v84_v7 = vmul.f32 -0.5, %v71_v3  ;;  %p177_p2 = scmp.ne.s32.totalorder %s110_s6, %s176_s7  ;;  %p182_p4 = scmp.lt.s32.totalorder %s176_s7, %s176_s7 }
  0x2a   :  { %v78_v10 = vand.u32 2147483647, %v70_v2  ;;  %v87_v14 = vand.u32 2147483647, %v71_v3 }
  0x2b   :  { %128 = vlog2.f32 %v72_v4  ;;  %v76_v8 = vadd.f32 1.0, %v75_v6  ;;  %v85_v11 = vadd.f32 1.0, %v84_v7  ;;  %p183_p5 = por %p182_p4, %p181_p3 }
  0x2c   :  { %130 = vlog2.f32 %v81_v5  ;;  %vm79_vm0 = vcmp.lt.f32.partialorder %v78_v10, 0.0004427343  ;;  %vm88_vm1 = vcmp.lt.f32.partialorder %v87_v14, 0.0004427343 }
  0x2d   :  { %v77_v18 = vmul.f32 %v76_v8, %v70_v2  ;;  %v86_v21 = vmul.f32 %v85_v11, %v71_v3  ;;  %p184_p6 = pnand %p183_p5, %p177_p2 }
  0x31   :  { %v125_v9 = vpop.eup %124 }
  0x32   :  { %v127_v12 = vpop.eup %126  ;;  %v63_v16 = vmul.f32 0.6931472, %v125_v9 }
  0x33   :  { %v65_v17 = vmul.f32 0.6931472, %v127_v12 }
  0x34   :  { %v66_v25 = vmul.f32 %v63_v16, %v60_v13 }
  0x35   :  { %v129_v19 = vpop.eup %128  ;;  %v67_v27 = vmul.f32 %v65_v17, %v61_v15 }
  0x36   :  { %v131_v22 = vpop.eup %130  ;;  %v74_v24 = vmul.f32 0.6931472, %v129_v19 }
  0x37   :  { %v83_v26 = vmul.f32 0.6931472, %v131_v22 }
  0x38   :  { %v80_v28 = vsel %vm79_vm0, %v77_v18, %v74_v24 }
  0x39   :  { %v89_v29 = vsel %vm88_vm1, %v86_v21, %v83_v26  ;;  %v90_v30 = vmul.f32 %v80_v28, %v68_v20 }
  0x3a   :  { %v91_v31 = vmul.f32 %v89_v29, %v69_v23 }
  0x3b   :  { %v92_v32 = vadd.f32 %v90_v30, %v66_v25 }
  0x3c   :  { %v93_v33 = vadd.f32 %v91_v31, %v67_v27 }
  0x3e   :  { %v94_v34 = vadd.f32 %v93_v33, %v92_v32 }
  0x40   :  { %102 = vst [vmem:[#allocation8] sm:$0xff] %v94_v34 }
  0x41   :  { %187 = shalt.err (!%p184_p6)
}
  0x42   :  { %s188_s10 = scalar_lea.hbm %s262_s2, 128 }
  0x43   :  { %p189_p7 = scmp.ne.s32.totalorder %s262_s2, %s188_s10  ;;  %p192_p8 = scmp.lt.u32.totalorder %s188_s10, %s262_s2 }
  0x45   :  { %p194_p9 = pnand %p192_p8, %p189_p7 }
  0x47   :  { %197 = shalt.err (!%p194_p9)
}
  0x48   :  { %112 = dma.vmem_to_hbm [thread:$0]  %s110_s6, 128, %s262_s2, [#allocation5]  }
  0x49   :  { %202 = dma.done.wait [#allocation5], 128  }
  0x4a   :  { %203 = vsyncadd [#allocation5], 4294967168 }
  0x4b   :  { %116 = vsyncpa [#allocation4], 1 }
  0x4c   :  { %117 = vsyncpa [#allocation7], 1 }
  0x4d   :  { %118 = vsyncpa [#allocation5], 1 }

</bundles_post_ra>
